<compile_context>
chip_gen: v6e
topology: v6e:2x2x1
jax: 0.10.0
libtpu: 0.0.40
codegen_flags: <defaults>
</compile_context>

<pallas_src>
import functools

import jax
import jax.numpy as jnp
from jax.experimental import pallas as pl
from jax.experimental.pallas import tpu as pltpu

FP8_MAX = 448.0      # float8_e4m3fn max (HPU-style saturating cast)
_MIN_SCALE = 1e-8    # floor so an all-zero calibration tensor never gives scale=0


def _round_up(x, m):
    return ((x + m - 1) // m) * m


def _fp8_quant_dequant(x, inv_scale, out_dtype=jnp.bfloat16):
    """fp8 (e4m3) quantization round-trip: scale, saturate, cast down/up."""
    q = jnp.clip(x.astype(jnp.float32) * inv_scale, -FP8_MAX, FP8_MAX)
    q = q.astype(jnp.float8_e4m3fn)
    return q.astype(out_dtype)


def _tpu_generation():
    try:
        return jax.devices()[0].device_kind.lower()
    except Exception:
        return ""


def _vmem_cap_bytes(gen):
    # v7x: 64 MiB physical VMEM per TensorCore -> conservative 48 MiB cap.
    # v5e/v6e (and v4/v5p): 128 MiB physical -> allow up to 100 MiB.
    if "v7" in gen:
        return 48 * 1024 * 1024
    return 100 * 1024 * 1024


def _pick_tiles(K, N, *, multi_tc, tn_default=1024, tk_default=1024):
    """N/K tile selection, independent of M so the weight can be padded once."""
    tk = min(tk_default, _round_up(K, 128))
    tn = min(tn_default, _round_up(N, 128))
    np_lane = _round_up(N, 128)
    if multi_tc and np_lane // tn < 2 and np_lane >= 256:
        # v7x only (2 TensorCores): guarantee >= 2 N blocks so both cores get
        # work; keep the split 256-aligned (2x256^2 MXU) when width allows.
        half = np_lane // 2
        align = 256 if half >= 256 else 128
        tn = max(align, (half // align) * align)
    return tk, tn


# ---------------------------------------------------------------------------
# Fused Pallas kernel: fp8 GEMM -> dequant scale -> hp_dtype cast -> +bias
# ---------------------------------------------------------------------------
def _linear_kernel(x_ref, w_ref, b_ref, dq_ref, o_ref, acc_ref, *,
                   native_fp8_dot):
    """One (tm, tn) output tile; k (reduction) is the last grid axis."""
    k = pl.program_id(2)

    @pl.when(k == 0)
    def _():
        acc_ref[...] = jnp.zeros_like(acc_ref)

    if native_fp8_dot:
        # v7x: the MXU accepts fp8 operands natively -> no per-tile VPU upcast,
        # half the operand VMEM, higher fp8 MXU rate.
        acc_ref[...] += jnp.dot(x_ref[...], w_ref[...],
                                preferred_element_type=jnp.float32)
    else:
        # v5e / v6e: upcast the fp8 (or bf16-fallback) tiles to bf16 for the
        # MXU; fp8 values are exactly representable in bf16.
        acc_ref[...] += jnp.dot(x_ref[...].astype(jnp.bfloat16),
                                w_ref[...].astype(jnp.bfloat16),
                                preferred_element_type=jnp.float32)

    @pl.when(k == pl.num_programs(2) - 1)
    def _():
        # dequant scale applied to the f32 accumulator, cast to hp_dtype, THEN
        # bias add in hp_dtype — same order as the PyTorch module
        # (matmul_fp8 -> quant_output -> post_all_reduce).
        out = (acc_ref[...] * dq_ref[...]).astype(o_ref.dtype)
        o_ref[...] = out + b_ref[...]


def _fp8_linear_padded(x, w, b, dq, *, tm, tn, tk, out_dtype,
                       native_fp8_dot, vmem_cap):
    """out[Mp,Np] = (x[Mp,Kp] @ w[Kp,Np]) * dq + b.  All shapes pre-padded."""
    Mp, Kp = x.shape
    Kp2, Np = w.shape
    assert Kp == Kp2 and Mp % tm == 0 and Np % tn == 0 and Kp % tk == 0

    x_b = jnp.dtype(x.dtype).itemsize
    w_b = jnp.dtype(w.dtype).itemsize
    o_b = jnp.dtype(out_dtype).itemsize
    b_b = jnp.dtype(b.dtype).itemsize

    # Double-buffered operand/output tiles + resident f32 accumulator.
    vmem_est = (2 * (tm * tk * x_b + tk * tn * w_b + tn * b_b + 4)
                + 2 * tm * tn * o_b + tm * tn * 4)
    vmem_limit = int(min(max(2 * vmem_est, 32 * 1024 * 1024), vmem_cap))

    cost = pl.CostEstimate(
        flops=2 * Mp * Kp * Np,
        transcendentals=0,
        bytes_accessed=int(Mp * Kp * x_b + Kp * Np * w_b + Mp * Np * o_b
                           + Np * b_b))

    kernel = functools.partial(_linear_kernel, native_fp8_dot=native_fp8_dot)

    # TODO(synk): for decode shapes (Mp//tm == 1) a 3-deep weight pipeline
    # (pipeline_mode=pl.Buffered(3)) would hide more HBM latency.
    return pl.pallas_call(
        kernel,
        out_shape=jax.ShapeDtypeStruct((Mp, Np), out_dtype),
        grid_spec=pltpu.PrefetchScalarGridSpec(
            num_scalar_prefetch=0,
            grid=(Mp // tm, Np // tn, Kp // tk),
            in_specs=[
                pl.BlockSpec((tm, tk), lambda i, j, k: (i, k)),   # activations
                pl.BlockSpec((tk, tn), lambda i, j, k: (k, j)),   # fp8 weight
                pl.BlockSpec((1, tn), lambda i, j, k: (0, j)),    # bias
                pl.BlockSpec((1, 1), lambda i, j, k: (0, 0)),     # dequant scale
            ],
            out_specs=pl.BlockSpec((tm, tn), lambda i, j, k: (i, j)),
            scratch_shapes=[pltpu.VMEM((tm, tn), jnp.float32)],
        ),
        compiler_params=pltpu.CompilerParams(
            dimension_semantics=("parallel", "parallel", "arbitrary"),
            vmem_limit_bytes=vmem_limit),
        cost_estimate=cost,
    )(x, w, b, dq)


# ---------------------------------------------------------------------------
# One-time capability probe (no per-call host sync / try-except)
# ---------------------------------------------------------------------------
_PROBE_CACHE = {}


def _probe_fp8_kernel(native_fp8_dot):
    """Check once whether Mosaic can lower fp8 loads (and, when requested, a
    native fp8 MXU dot) on this TPU generation.  Result is cached."""
    key = bool(native_fp8_dot)
    if key not in _PROBE_CACHE:
        try:
            x = jnp.zeros((8, 128), jnp.float8_e4m3fn)
            w = jnp.zeros((128, 128), jnp.float8_e4m3fn)
            b = jnp.zeros((1, 128), jnp.bfloat16)
            dq = jnp.ones((1, 1), jnp.float32)
            out = _fp8_linear_padded(x, w, b, dq, tm=8, tn=128, tk=128,
                                     out_dtype=jnp.bfloat16,
                                     native_fp8_dot=key,
                                     vmem_cap=32 * 1024 * 1024)
            jax.block_until_ready(out)
            _PROBE_CACHE[key] = True
        except Exception:
            _PROBE_CACHE[key] = False
    return _PROBE_CACHE[key]


# ---------------------------------------------------------------------------
# Module wrapper (mirrors PatchedLinearAllReduce.forward in QUANTIZE mode)
# ---------------------------------------------------------------------------
class PatchedLinearAllReduceJAX:
    def __init__(self, weight, bias, scale_input, scale_weight,
                 hp_dtype=jnp.bfloat16, tm=512, tn=1024, tk=1024):
        self.scale_input = max(float(scale_input), _MIN_SCALE)
        self.scale_weight = max(float(scale_weight), _MIN_SCALE)
        self.hp_dtype = hp_dtype
        self.mp_group = None           # matches the module's no-op all_reduce
        self.scoped_version = False

        gen = _tpu_generation()
        self._multi_tc = "v7" in gen   # 2 TensorCores / chip -> megacore split
        self._vmem_cap = _vmem_cap_bytes(gen)
        self._tm_default = tm

        weight = jnp.asarray(weight)
        self.out_features, self.in_features = weight.shape   # nn.Linear [N, K]
        K, N = self.in_features, self.out_features
        self.tk, self.tn = _pick_tiles(K, N, multi_tc=self._multi_tc,
                                       tn_default=tn, tk_default=tk)
        self.Kp, self.Np = _round_up(K, self.tk), _round_up(N, self.tn)

        # module stores self.weight = weight.t().contiguous() -> [K, N].
        # Quantize once, pad once (no per-call full-weight pad), keep fp8
        # (1 byte/elt) in HBM.
        wt = jnp.transpose(weight).astype(jnp.float32)
        wq = jnp.clip(wt * (1.0 / self.scale_weight), -FP8_MAX, FP8_MAX)
        wq = jnp.pad(wq, ((0, self.Kp - K), (0, self.Np - N)))
        self.weight_q = wq.astype(jnp.float8_e4m3fn)
        self._weight_bf16 = None       # built lazily only for the fallback path

        if bias is None:
            self.bias_p = jnp.zeros((1, self.Np), hp_dtype)
        else:
            self.bias_p = jnp.pad(
                jnp.asarray(bias, hp_dtype).reshape(1, N),
                ((0, 0), (0, self.Np - N)))

        # Dequant scale as a tiny runtime array -> one compiled kernel serves
        # every layer with the same shapes regardless of its scale values.
        self.dequant = jnp.full((1, 1), self.scale_input * self.scale_weight,
                                jnp.float32)

        # One-time capability probe: native fp8 MXU dot (v7x), else fp8 loads
        # with an in-kernel bf16 upcast (v5e/v6e), else bf16 fallback.
        if self._multi_tc and _probe_fp8_kernel(True):
            self._use_fp8, self._native_fp8_dot = True, True
        elif _probe_fp8_kernel(False):
            self._use_fp8, self._native_fp8_dot = True, False
        else:
            self._use_fp8, self._native_fp8_dot = False, False
            # TODO(synk): on v5e keep the weight packed as uint8 bit-patterns
            # and decode e4m3->bf16 in-kernel (pltpu.bitcast + shifts) instead
            # of materializing a 2-byte bf16 weight.

    def __call__(self, x):
        orig_shape = x.shape
        K, N = self.in_features, self.out_features
        x2 = x.reshape(-1, K)
        M = x2.shape[0]

        # quant_input: per-tensor fp8_e4m3 quantization as a cheap XLA
        # pre-pass -> activations stream into the kernel at 1 B/elt and the
        # quant math is not recomputed for every N block.
        q = jnp.clip(x2.astype(jnp.float32) * (1.0 / self.scale_input),
                     -FP8_MAX, FP8_MAX).astype(jnp.float8_e4m3fn)
        if self._use_fp8:
            xq, wq = q, self.weight_q
        else:
            if self._weight_bf16 is None:
                self._weight_bf16 = self.weight_q.astype(jnp.bfloat16)
            xq, wq = q.astype(jnp.bfloat16), self._weight_bf16

        tm = min(self._tm_default, _round_up(M, 8))
        Mp = _round_up(M, tm)
        if (Mp, self.Kp) != xq.shape:
            xq = jnp.pad(xq, ((0, Mp - M), (0, self.Kp - K)))

        out = _fp8_linear_padded(
            xq, wq, self.bias_p, self.dequant,
            tm=tm, tn=self.tn, tk=self.tk, out_dtype=self.hp_dtype,
            native_fp8_dot=self._native_fp8_dot, vmem_cap=self._vmem_cap)

        if (Mp, self.Np) != (M, N):
            out = out[:M, :N]

        # quant_output: identity (already hp_dtype); bias is fused into the
        # kernel epilogue (post_all_reduce); all_reduce is a no-op.
        out = self.all_reduce(out)
        return out.reshape(*orig_shape[:-1], N)

    def all_reduce(self, x):
        # mp_group is None -> no-op, exactly as in the PyTorch module.
        # TODO(synk): with a real tensor-parallel mesh this becomes
        # jax.lax.psum under shard_map / a remote-DMA ring reduce.
        return x


# ---------------------------------------------------------------------------
if __name__ == "__main__":
    batch, seq = 2, 8
    in_features, out_features = 256, 512

    key = jax.random.PRNGKey(0)
    kx, kw, kb = jax.random.split(key, 3)

    x = jax.random.normal(kx, (batch, seq, in_features), dtype=jnp.float32)
    weight = jax.random.normal(kw, (out_features, in_features),
                               dtype=jnp.float32) * 0.05
    bias = jax.random.normal(kb, (out_features,), dtype=jnp.float32) * 0.1

    # deterministic per-tensor scales (max-abs / fp8 max) with a zero floor
    scale_input = max(float(jnp.max(jnp.abs(x))) / FP8_MAX, _MIN_SCALE)
    scale_weight = max(float(jnp.max(jnp.abs(weight))) / FP8_MAX, _MIN_SCALE)

    mod = PatchedLinearAllReduceJAX(weight, bias, scale_input, scale_weight)

    out = jax.block_until_ready(mod(x))
    assert out.shape == (batch, seq, out_features)
    assert out.dtype == jnp.bfloat16

    # pure-JAX reference with identical quantization semantics
    x2 = x.reshape(-1, in_features)
    xq = _fp8_quant_dequant(x2, 1.0 / scale_input, jnp.float32)
    wq = mod.weight_q[:in_features, :out_features].astype(jnp.float32)
    ref = (xq @ wq) * (scale_input * scale_weight)
    ref = ref.astype(jnp.bfloat16) + bias.astype(jnp.bfloat16)
    ref = ref.reshape(batch, seq, out_features)

    if not jnp.allclose(out.astype(jnp.float32), ref.astype(jnp.float32),
                        rtol=2e-2, atol=2e-2):
        raise AssertionError("Pallas output does not match reference")

    print("KERNEL_OK")
</pallas_src>

<mosaic_0001>
module attributes {stable_mosaic.version = 11 : i64} {
  func.func @_linear_kernel(%arg0: i32, %arg1: i32, %arg2: i32, %arg3: memref<8x128xf8E4M3FN, #tpu.memory_space<vmem>>, %arg4: memref<128x128xf8E4M3FN, #tpu.memory_space<vmem>>, %arg5: memref<1x128xbf16, #tpu.memory_space<vmem>>, %arg6: memref<1x1xf32, #tpu.memory_space<vmem>>, %arg7: memref<8x128xbf16, #tpu.memory_space<vmem>>, %arg8: memref<8x128xf32, #tpu.memory_space<vmem>>) attributes {dimension_semantics = [#tpu.dimension_semantics<parallel>, #tpu.dimension_semantics<parallel>, #tpu.dimension_semantics<arbitrary>], iteration_bounds = array<i64: 1, 1, 1>, scalar_prefetch = 0 : i64, scratch_operands = 1 : i64, tpu.core_type = #tpu.core_type<tc>, window_params = [{transform_indices = @transform_0, window_bounds = array<i64: 8, 128>}, {transform_indices = @transform_1, window_bounds = array<i64: 128, 128>}, {transform_indices = @transform_2, window_bounds = array<i64: 1, 128>}, {pipeline_mode = #tpu.pipeline_mode<synchronous>, transform_indices = @transform_3, window_bounds = array<i64: 1, 1>}, {transform_indices = @transform_4, window_bounds = array<i64: 8, 128>}]} {
    %c0_i32 = arith.constant 0 : i32
    %0 = arith.cmpi eq, %arg2, %c0_i32 : i32
    %1 = arith.extui %0 : i1 to i32
    %c0_i32_0 = arith.constant 0 : i32
    %2 = arith.cmpi ne, %1, %c0_i32_0 : i32
    scf.if %2 {
      %cst_10 = arith.constant 0.000000e+00 : f32
      %14 = vector.broadcast %cst_10 : f32 to vector<8x128xf32>
      %c0_11 = arith.constant 0 : index
      %c0_12 = arith.constant 0 : index
      %15 = vector.load %arg8[%c0_11, %c0_12] : memref<8x128xf32, #tpu.memory_space<vmem>>, vector<8x128xf32>
      tpu.vector_store %arg8[%c0_11, %c0_12], %14 {strides = array<i32>} : memref<8x128xf32, #tpu.memory_space<vmem>>, vector<8x128xf32>,
    } else {
    }
    %c0 = arith.constant 0 : index
    %c0_1 = arith.constant 0 : index
    %3 = vector.load %arg8[%c0, %c0_1] : memref<8x128xf32, #tpu.memory_space<vmem>>, vector<8x128xf32>
    %c0_2 = arith.constant 0 : index
    %c0_3 = arith.constant 0 : index
    %4 = vector.load %arg3[%c0_2, %c0_3] : memref<8x128xf8E4M3FN, #tpu.memory_space<vmem>>, vector<8x128xf8E4M3FN>
    %5 = arith.extf %4 : vector<8x128xf8E4M3FN> to vector<8x128xbf16>
    %c0_4 = arith.constant 0 : index
    %c0_5 = arith.constant 0 : index
    %6 = vector.load %arg4[%c0_4, %c0_5] : memref<128x128xf8E4M3FN, #tpu.memory_space<vmem>>, vector<128x128xf8E4M3FN>
    %7 = arith.extf %6 : vector<128x128xf8E4M3FN> to vector<128x128xbf16>
    %cst = arith.constant dense<0.000000e+00> : vector<8x128xf32>
    %8 = tpu.matmul %5, %7, %cst {dimension_numbers = #tpu.dot_dimension_numbers<[1], [0], [0], [1], [0, 0, 1, 1], [], []>} : vector<8x128xbf16>, vector<128x128xbf16>, vector<8x128xf32> -> vector<8x128xf32>
    %9 = arith.addf %3, %8 : vector<8x128xf32>
    %c0_6 = arith.constant 0 : index
    %c0_7 = arith.constant 0 : index
    %10 = vector.load %arg8[%c0_6, %c0_7] : memref<8x128xf32, #tpu.memory_space<vmem>>, vector<8x128xf32>
    tpu.vector_store %arg8[%c0_6, %c0_7], %9 {strides = array<i32>} : memref<8x128xf32, #tpu.memory_space<vmem>>, vector<8x128xf32>,
    %c0_i32_8 = arith.constant 0 : i32
    %11 = arith.cmpi eq, %arg2, %c0_i32_8 : i32
    %12 = arith.extui %11 : i1 to i32
    %c0_i32_9 = arith.constant 0 : i32
    %13 = arith.cmpi ne, %12, %c0_i32_9 : i32
    scf.if %13 {
      %c0_10 = arith.constant 0 : index
      %c0_11 = arith.constant 0 : index
      %14 = vector.load %arg8[%c0_10, %c0_11] : memref<8x128xf32, #tpu.memory_space<vmem>>, vector<8x128xf32>
      %c0_12 = arith.constant 0 : index
      %c0_13 = arith.constant 0 : index
      %15 = vector.load %arg6[%c0_12, %c0_13] : memref<1x1xf32, #tpu.memory_space<vmem>>, vector<1x1xf32>
      %16 = vector.broadcast %15 : vector<1x1xf32> to vector<8x128xf32>
      %17 = arith.mulf %14, %16 : vector<8x128xf32>
      %18 = arith.truncf %17 : vector<8x128xf32> to vector<8x128xbf16>
      %c0_14 = arith.constant 0 : index
      %c0_15 = arith.constant 0 : index
      %19 = vector.load %arg5[%c0_14, %c0_15] : memref<1x128xbf16, #tpu.memory_space<vmem>>, vector<1x128xbf16>
      %20 = vector.broadcast %19 : vector<1x128xbf16> to vector<8x128xbf16>
      %21 = arith.addf %18, %20 : vector<8x128xbf16>
      %c0_16 = arith.constant 0 : index
      %c0_17 = arith.constant 0 : index
      %22 = vector.load %arg7[%c0_16, %c0_17] : memref<8x128xbf16, #tpu.memory_space<vmem>>, vector<8x128xbf16>
      tpu.vector_store %arg7[%c0_16, %c0_17], %21 {strides = array<i32>} : memref<8x128xbf16, #tpu.memory_space<vmem>>, vector<8x128xbf16>,
    } else {
    }
    return
  }
  func.func @transform_0(%arg0: i32, %arg1: i32, %arg2: i32) -> (i32, i32) {
    %c0_i32 = arith.constant 0 : i32
    return %arg0, %arg2 : i32, i32
  }
  func.func @transform_1(%arg0: i32, %arg1: i32, %arg2: i32) -> (i32, i32) {
    %c0_i32 = arith.constant 0 : i32
    return %arg2, %arg1 : i32, i32
  }
  func.func @transform_2(%arg0: i32, %arg1: i32, %arg2: i32) -> (i32, i32) {
    %c0_i32 = arith.constant 0 : i32
    %c0_i32_0 = arith.constant 0 : i32
    return %c0_i32, %arg1 : i32, i32
  }
  func.func @transform_3(%arg0: i32, %arg1: i32, %arg2: i32) -> (i32, i32) {
    %c0_i32 = arith.constant 0 : i32
    %c0_i32_0 = arith.constant 0 : i32
    %c0_i32_1 = arith.constant 0 : i32
    return %c0_i32, %c0_i32_0 : i32, i32
  }
  func.func @transform_4(%arg0: i32, %arg1: i32, %arg2: i32) -> (i32, i32) {
    %c0_i32 = arith.constant 0 : i32
    return %arg0, %arg1 : i32, i32
  }
}

module attributes {stable_mosaic.version = 11 : i64} {
  func.func @_linear_kernel(%arg0: i32, %arg1: i32, %arg2: i32, %arg3: memref<16x256xbf16, #tpu.memory_space<vmem>>, %arg4: memref<256x512xbf16, #tpu.memory_space<vmem>>, %arg5: memref<1x512xbf16, #tpu.memory_space<vmem>>, %arg6: memref<1x1xf32, #tpu.memory_space<vmem>>, %arg7: memref<16x512xbf16, #tpu.memory_space<vmem>>, %arg8: memref<16x512xf32, #tpu.memory_space<vmem>>) attributes {dimension_semantics = [#tpu.dimension_semantics<parallel>, #tpu.dimension_semantics<parallel>, #tpu.dimension_semantics<arbitrary>], iteration_bounds = array<i64: 1, 1, 1>, scalar_prefetch = 0 : i64, scratch_operands = 1 : i64, tpu.core_type = #tpu.core_type<tc>, window_params = [{transform_indices = @transform_0, window_bounds = array<i64: 16, 256>}, {transform_indices = @transform_1, window_bounds = array<i64: 256, 512>}, {transform_indices = @transform_2, window_bounds = array<i64: 1, 512>}, {pipeline_mode = #tpu.pipeline_mode<synchronous>, transform_indices = @transform_3, window_bounds = array<i64: 1, 1>}, {transform_indices = @transform_4, window_bounds = array<i64: 16, 512>}]} {
    %c0_i32 = arith.constant 0 : i32
    %0 = arith.cmpi eq, %arg2, %c0_i32 : i32
    %1 = arith.extui %0 : i1 to i32
    %c0_i32_0 = arith.constant 0 : i32
    %2 = arith.cmpi ne, %1, %c0_i32_0 : i32
    scf.if %2 {
      %cst_10 = arith.constant 0.000000e+00 : f32
      %12 = vector.broadcast %cst_10 : f32 to vector<16x512xf32>
      %c0_11 = arith.constant 0 : index
      %c0_12 = arith.constant 0 : index
      %13 = vector.load %arg8[%c0_11, %c0_12] : memref<16x512xf32, #tpu.memory_space<vmem>>, vector<16x512xf32>
      tpu.vector_store %arg8[%c0_11, %c0_12], %12 {strides = array<i32>} : memref<16x512xf32, #tpu.memory_space<vmem>>, vector<16x512xf32>,
    } else {
    }
    %c0 = arith.constant 0 : index
    %c0_1 = arith.constant 0 : index
    %3 = vector.load %arg8[%c0, %c0_1] : memref<16x512xf32, #tpu.memory_space<vmem>>, vector<16x512xf32>
    %c0_2 = arith.constant 0 : index
    %c0_3 = arith.constant 0 : index
    %4 = vector.load %arg3[%c0_2, %c0_3] : memref<16x256xbf16, #tpu.memory_space<vmem>>, vector<16x256xbf16>
    %c0_4 = arith.constant 0 : index
    %c0_5 = arith.constant 0 : index
    %5 = vector.load %arg4[%c0_4, %c0_5] : memref<256x512xbf16, #tpu.memory_space<vmem>>, vector<256x512xbf16>
    %cst = arith.constant dense<0.000000e+00> : vector<16x512xf32>
    %6 = tpu.matmul %4, %5, %cst {dimension_numbers = #tpu.dot_dimension_numbers<[1], [0], [0], [1], [0, 0, 1, 1], [], []>} : vector<16x256xbf16>, vector<256x512xbf16>, vector<16x512xf32> -> vector<16x512xf32>
    %7 = arith.addf %3, %6 : vector<16x512xf32>
    %c0_6 = arith.constant 0 : index
    %c0_7 = arith.constant 0 : index
    %8 = vector.load %arg8[%c0_6, %c0_7] : memref<16x512xf32, #tpu.memory_space<vmem>>, vector<16x512xf32>
    tpu.vector_store %arg8[%c0_6, %c0_7], %7 {strides = array<i32>} : memref<16x512xf32, #tpu.memory_space<vmem>>, vector<16x512xf32>,
    %c0_i32_8 = arith.constant 0 : i32
    %9 = arith.cmpi eq, %arg2, %c0_i32_8 : i32
    %10 = arith.extui %9 : i1 to i32
    %c0_i32_9 = arith.constant 0 : i32
    %11 = arith.cmpi ne, %10, %c0_i32_9 : i32
    scf.if %11 {
      %c0_10 = arith.constant 0 : index
      %c0_11 = arith.constant 0 : index
      %12 = vector.load %arg8[%c0_10, %c0_11] : memref<16x512xf32, #tpu.memory_space<vmem>>, vector<16x512xf32>
      %c0_12 = arith.constant 0 : index
      %c0_13 = arith.constant 0 : index
      %13 = vector.load %arg6[%c0_12, %c0_13] : memref<1x1xf32, #tpu.memory_space<vmem>>, vector<1x1xf32>
      %14 = vector.broadcast %13 : vector<1x1xf32> to vector<16x512xf32>
      %15 = arith.mulf %12, %14 : vector<16x512xf32>
      %16 = arith.truncf %15 : vector<16x512xf32> to vector<16x512xbf16>
      %c0_14 = arith.constant 0 : index
      %c0_15 = arith.constant 0 : index
      %17 = vector.load %arg5[%c0_14, %c0_15] : memref<1x512xbf16, #tpu.memory_space<vmem>>, vector<1x512xbf16>
      %18 = vector.broadcast %17 : vector<1x512xbf16> to vector<16x512xbf16>
      %19 = arith.addf %16, %18 : vector<16x512xbf16>
      %c0_16 = arith.constant 0 : index
      %c0_17 = arith.constant 0 : index
      %20 = vector.load %arg7[%c0_16, %c0_17] : memref<16x512xbf16, #tpu.memory_space<vmem>>, vector<16x512xbf16>
      tpu.vector_store %arg7[%c0_16, %c0_17], %19 {strides = array<i32>} : memref<16x512xbf16, #tpu.memory_space<vmem>>, vector<16x512xbf16>,
    } else {
    }
    return
  }
  func.func @transform_0(%arg0: i32, %arg1: i32, %arg2: i32) -> (i32, i32) {
    %c0_i32 = arith.constant 0 : i32
    return %arg0, %arg2 : i32, i32
  }
  func.func @transform_1(%arg0: i32, %arg1: i32, %arg2: i32) -> (i32, i32) {
    %c0_i32 = arith.constant 0 : i32
    return %arg2, %arg1 : i32, i32
  }
  func.func @transform_2(%arg0: i32, %arg1: i32, %arg2: i32) -> (i32, i32) {
    %c0_i32 = arith.constant 0 : i32
    %c0_i32_0 = arith.constant 0 : i32
    return %c0_i32, %arg1 : i32, i32
  }
  func.func @transform_3(%arg0: i32, %arg1: i32, %arg2: i32) -> (i32, i32) {
    %c0_i32 = arith.constant 0 : i32
    %c0_i32_0 = arith.constant 0 : i32
    %c0_i32_1 = arith.constant 0 : i32
    return %c0_i32, %c0_i32_0 : i32, i32
  }
  func.func @transform_4(%arg0: i32, %arg1: i32, %arg2: i32) -> (i32, i32) {
    %c0_i32 = arith.constant 0 : i32
    return %arg0, %arg1 : i32, i32
  }
}

</mosaic_0001>

<bundles_post_ra>
// kernel: tpu_custom_call.1
= control target key start
LH: loop header
LB: loop body
LE: loop exit
PB: predicated region body
PF: predicated region fallthrough
CT: control target
= control target key end

     0   :  { %s968_s0 = inlined_call_operand.vmem [shape: f8e4m3fn[8,128], index: 0, kind: input, shape index: {}]   ;;  %s969_s1 = inlined_call_operand.hbm [shape: f8e4m3fn[128,128], index: 1, kind: input, shape index: {}]   ;;  %s970_s2 = inlined_call_operand.vmem [shape: bf16[1,128], index: 2, kind: input, shape index: {}]   ;;  %s971_s3 = inlined_call_operand.<no memory space> [shape: f32[1,1], index: 3, kind: input, shape index: {}]   ;;  %s972_s4 = inlined_call_operand.hbm [shape: bf16[8,128], index: 4, kind: output, shape index: {}]  }
   0x1   :  { %v9_v0 = vstv %s971_s3 }
   0x2   :  { %10 = vst [vmem:[#allocation3] sm:$0x1] %v9_v0 }
   0x3   :  { %11 = vsyncpa [#allocation5], 0 }
   0x4   :  { %12 = vsyncpa [#allocation6], 0  ;;  %s742_s17 = smov [#allocation4]  }
   0x5   :  { %s20_s18 = sshll.u32 %s742_s17, 4  ;;  %s21_s18 = int_to_ptr.vmem [resolvable:$true] %s20_s18 }
   0x6   :  { %s706_s19 = scalar_lea.vmem %s21_s18, 512  ;;  %p711_p1 = scmp.lt.s32.totalorder %s21_s18, %s21_s18 }
   0x7   :  { %p707_p0 = scmp.ne.s32.totalorder %s21_s18, %s706_s19  ;;  %p712_p2 = scmp.lt.s32.totalorder %s706_s19, %s706_s19 }
   0x9   :  { %p713_p3 = por %p712_p2, %p711_p1 }
   0xb   :  { %p714_p4 = pnand %p713_p3, %p707_p0 }
   0xd   :  { %717 = shalt.err (!%p714_p4)
}
   0xe   :  { %s743_s20 = smov 128   ;;  %s744_s21 = smov 8  }
   0xf   :  { %26 = dma.hbm_to_vmem [thread:$0]  %s969_s1, 512, %s21_s18, [#allocation5], %s743_s20, %s743_s20, %s744_s21  }
  0x10   :  { %738 = dma.done.wait [#allocation5], 512  }
  0x11   :  { %739 = vsyncadd [#allocation5], 4294966784  ;;  %v41_v1 = vld [vmem:[%s968_s0] sm:$0x3] }
  0x12   :  { %42 = vst [vmem:[#allocation8] sm:$0xff] %v41_v1  ;;  %v73_v9 = vld [vmem:[#allocation4] sm:$0xff]  ;;  %v787_v10 = vld [vmem:[#allocation4 + $0x8] sm:$0xff]  ;;  %v789_v11 = vld [vmem:[#allocation4 + $0x10] sm:$0xff] }
  0x13   :  { %v791_v12 = vld [vmem:[#allocation4 + $0x18] sm:$0xff] }
  0x19   :  { %v43_v2 = vld [vmem:[#allocation8] sm:$0x3] }
  0x1a   :  { %v44_v3 = vunpack.c.0.f8e4m3b11 %v43_v2 }
  0x1c   :  { %v48_v4 = vand.u32 2147483647, %v44_v3  ;;  %vm50_vm0 = vcmp.ne.f32.partialorder %v44_v3, %v44_v3  ;;  %v51_v5 = vmul.f32 16.0, %v44_v3 }
  0x1e   :  { %vm49_vm1 = vcmp.gt.f32.partialorder %v48_v4, 29.0  ;;  %v52_v6 = vsel %vm50_vm0, -0.0, %v51_v5 }
  0x1f   :  { %v783_v7 = vsel %vm49_vm1, nan, %v52_v6 }
  0x20   :  { %v72_v8 = vpack.c.bf16 %v783_v7, %v783_v7 }
  0x21   :  { %77 = vst [vmem:[#allocation9] sm:$0xff] %v73_v9 }
  0x28   :  { %v78_v13 = vld [vmem:[#allocation9] sm:$0x3] }
  0x29   :  { %v79_v14 = vunpack.c.0.f8e4m3b11 %v78_v13 }
  0x2b   :  { %v83_v15 = vand.u32 2147483647, %v79_v14  ;;  %vm85_vm2 = vcmp.ne.f32.partialorder %v79_v14, %v79_v14  ;;  %v86_v16 = vmul.f32 16.0, %v79_v14 }
  0x2d   :  { %vm793_vm3 = vcmp.gt.f32.partialorder %v83_v15, 29.0  ;;  %v797_v18 = vsel %vm85_vm2, -0.0, %v86_v16 }
  0x2e   :  { %v88_v19 = vsel %vm793_vm3, nan, %v797_v18 }
  0x2f   :  { %107 = vst [vmem:[#allocation10] sm:$0xff] %v73_v9 }
  0x36   :  { %v109_v20 = vld [vmem:[#allocation10 + $0x2] sm:$0x3] }
  0x37   :  { %v110_v21 = vunpack.c.0.f8e4m3b11 %v109_v20 }
  0x39   :  { %v114_v22 = vand.u32 2147483647, %v110_v21  ;;  %vm116_vm4 = vcmp.ne.f32.partialorder %v110_v21, %v110_v21  ;;  %v117_v23 = vmul.f32 16.0, %v110_v21 }
  0x3b   :  { %vm802_vm5 = vcmp.gt.f32.partialorder %v114_v22, 29.0  ;;  %v806_v25 = vsel %vm116_vm4, -0.0, %v117_v23 }
  0x3c   :  { %v119_v26 = vsel %vm802_vm5, nan, %v806_v25 }
  0x3d   :  { %138 = vst [vmem:[#allocation11] sm:$0xff] %v73_v9 }
  0x44   :  { %v140_v27 = vld [vmem:[#allocation11 + $0x4] sm:$0x3] }
  0x45   :  { %v141_v28 = vunpack.c.0.f8e4m3b11 %v140_v27 }
  0x47   :  { %v145_v29 = vand.u32 2147483647, %v141_v28  ;;  %vm147_vm6 = vcmp.ne.f32.partialorder %v141_v28, %v141_v28  ;;  %v148_v30 = vmul.f32 16.0, %v141_v28 }
  0x49   :  { %vm811_vm7 = vcmp.gt.f32.partialorder %v145_v29, 29.0  ;;  %v815_v32 = vsel %vm147_vm6, -0.0, %v148_v30 }
  0x4a   :  { %v150_v33 = vsel %vm811_vm7, nan, %v815_v32 }
  0x4b   :  { %169 = vst [vmem:[#allocation12] sm:$0xff] %v73_v9 }
  0x52   :  { %v171_v34 = vld [vmem:[#allocation12 + $0x6] sm:$0x3] }
  0x53   :  { %v172_v35 = vunpack.c.0.f8e4m3b11 %v171_v34 }
  0x55   :  { %v176_v36 = vand.u32 2147483647, %v172_v35  ;;  %vm178_vm8 = vcmp.ne.f32.partialorder %v172_v35, %v172_v35  ;;  %v179_v37 = vmul.f32 16.0, %v172_v35 }
  0x57   :  { %vm820_vm9 = vcmp.gt.f32.partialorder %v176_v36, 29.0  ;;  %v824_v39 = vsel %vm178_vm8, -0.0, %v179_v37 }
  0x58   :  { %v181_v40 = vsel %vm820_vm9, nan, %v824_v39 }
  0x59   :  { %200 = vst [vmem:[#allocation13] sm:$0xff] %v787_v10 }
  0x60   :  { %v201_v41 = vld [vmem:[#allocation13] sm:$0x3] }
  0x61   :  { %v202_v42 = vunpack.c.0.f8e4m3b11 %v201_v41 }
  0x63   :  { %v206_v43 = vand.u32 2147483647, %v202_v42  ;;  %vm208_vm10 = vcmp.ne.f32.partialorder %v202_v42, %v202_v42  ;;  %v209_v44 = vmul.f32 16.0, %v202_v42 }
  0x65   :  { %vm830_vm11 = vcmp.gt.f32.partialorder %v206_v43, 29.0  ;;  %v834_v46 = vsel %vm208_vm10, -0.0, %v209_v44 }
  0x66   :  { %v211_v47 = vsel %vm830_vm11, nan, %v834_v46 }
  0x67   :  { %230 = vst [vmem:[#allocation14] sm:$0xff] %v787_v10 }
  0x6e   :  { %v232_v48 = vld [vmem:[#allocation14 + $0x2] sm:$0x3] }
  0x6f   :  { %v233_v49 = vunpack.c.0.f8e4m3b11 %v232_v48 }
  0x71   :  { %v237_v50 = vand.u32 2147483647, %v233_v49  ;;  %vm239_vm12 = vcmp.ne.f32.partialorder %v233_v49, %v233_v49  ;;  %v240_v51 = vmul.f32 16.0, %v233_v49 }
  0x73   :  { %vm840_vm13 = vcmp.gt.f32.partialorder %v237_v50, 29.0  ;;  %v844_v53 = vsel %vm239_vm12, -0.0, %v240_v51 }
  0x74   :  { %v242_v54 = vsel %vm840_vm13, nan, %v844_v53 }
  0x75   :  { %261 = vst [vmem:[#allocation15] sm:$0xff] %v787_v10 }
  0x7c   :  { %v263_v55 = vld [vmem:[#allocation15 + $0x4] sm:$0x3] }
  0x7d   :  { %v264_v56 = vunpack.c.0.f8e4m3b11 %v263_v55 }
  0x7f   :  { %v268_v57 = vand.u32 2147483647, %v264_v56  ;;  %vm270_vm14 = vcmp.ne.f32.partialorder %v264_v56, %v264_v56  ;;  %v271_v58 = vmul.f32 16.0, %v264_v56 }
  0x81   :  { %vm850_vm15 = vcmp.gt.f32.partialorder %v268_v57, 29.0  ;;  %v854_v60 = vsel %vm270_vm14, -0.0, %v271_v58 }
  0x82   :  { %v273_v61 = vsel %vm850_vm15, nan, %v854_v60 }
  0x83   :  { %292 = vst [vmem:[#allocation16] sm:$0xff] %v787_v10 }
  0x8a   :  { %v294_v62 = vld [vmem:[#allocation16 + $0x6] sm:$0x3] }
  0x8b   :  { %v295_v63 = vunpack.c.0.f8e4m3b11 %v294_v62 }
  0x8d   :  { %v299_v0 = vand.u32 2147483647, %v295_v63  ;;  %vm301_vm0 = vcmp.ne.f32.partialorder %v295_v63, %v295_v63  ;;  %v302_v1 = vmul.f32 16.0, %v295_v63 }
  0x8f   :  { %vm860_vm1 = vcmp.gt.f32.partialorder %v299_v0, 29.0  ;;  %v864_v3 = vsel %vm301_vm0, -0.0, %v302_v1 }
  0x90   :  { %v304_v4 = vsel %vm860_vm1, nan, %v864_v3 }
  0x91   :  { %323 = vst [vmem:[#allocation17] sm:$0xff] %v789_v11 }
  0x98   :  { %v324_v5 = vld [vmem:[#allocation17] sm:$0x3] }
  0x99   :  { %v325_v6 = vunpack.c.0.f8e4m3b11 %v324_v5 }
  0x9b   :  { %v329_v9 = vand.u32 2147483647, %v325_v6  ;;  %vm331_vm2 = vcmp.ne.f32.partialorder %v325_v6, %v325_v6  ;;  %v332_v10 = vmul.f32 16.0, %v325_v6 }
  0x9d   :  { %vm870_vm4 = vcmp.gt.f32.partialorder %v329_v9, 29.0  ;;  %v874_v14 = vsel %vm331_vm2, -0.0, %v332_v10 }
  0x9e   :  { %v334_v15 = vsel %vm870_vm4, nan, %v874_v14 }
  0x9f   :  { %353 = vst [vmem:[#allocation18] sm:$0xff] %v789_v11 }
  0xa6   :  { %v355_v16 = vld [vmem:[#allocation18 + $0x2] sm:$0x3] }
  0xa7   :  { %v356_v20 = vunpack.c.0.f8e4m3b11 %v355_v16 }
  0xa9   :  { %v360_v21 = vand.u32 2147483647, %v356_v20  ;;  %vm362_vm6 = vcmp.ne.f32.partialorder %v356_v20, %v356_v20  ;;  %v363_v22 = vmul.f32 16.0, %v356_v20 }
  0xab   :  { %vm880_vm8 = vcmp.gt.f32.partialorder %v360_v21, 29.0  ;;  %v884_v27 = vsel %vm362_vm6, -0.0, %v363_v22 }
  0xac   :  { %v365_v28 = vsel %vm880_vm8, nan, %v884_v27 }
  0xad   :  { %384 = vst [vmem:[#allocation19] sm:$0xff] %v789_v11 }
  0xb4   :  { %v386_v29 = vld [vmem:[#allocation19 + $0x4] sm:$0x3] }
  0xb5   :  { %v387_v30 = vunpack.c.0.f8e4m3b11 %v386_v29 }
  0xb7   :  { %v391_v34 = vand.u32 2147483647, %v387_v30  ;;  %vm393_vm10 = vcmp.ne.f32.partialorder %v387_v30, %v387_v30  ;;  %v394_v35 = vmul.f32 16.0, %v387_v30 }
  0xb9   :  { %vm890_vm12 = vcmp.gt.f32.partialorder %v391_v34, 29.0  ;;  %v395_v37 = vsel %vm393_vm10, -0.0, %v394_v35 }
  0xba   :  { %v396_v41 = vsel %vm890_vm12, nan, %v395_v37 }
  0xbb   :  { %415 = vst [vmem:[#allocation20] sm:$0xff] %v789_v11 }
  0xc2   :  { %v417_v42 = vld [vmem:[#allocation20 + $0x6] sm:$0x3] }
  0xc3   :  { %v418_v43 = vunpack.c.0.f8e4m3b11 %v417_v42 }
  0xc5   :  { %v422_v44 = vand.u32 2147483647, %v418_v43  ;;  %vm424_vm14 = vcmp.ne.f32.partialorder %v418_v43, %v418_v43  ;;  %v425_v48 = vmul.f32 16.0, %v418_v43 }
  0xc7   :  { %vm897_vm0 = vcmp.gt.f32.partialorder %v422_v44, 29.0  ;;  %v426_v50 = vsel %vm424_vm14, -0.0, %v425_v48 }
  0xc8   :  { %v427_v51 = vsel %vm897_vm0, nan, %v426_v50 }
  0xc9   :  { %446 = vst [vmem:[#allocation21] sm:$0xff] %v791_v12 }
  0xd0   :  { %v447_v55 = vld [vmem:[#allocation21] sm:$0x3] }
  0xd1   :  { %v448_v56 = vunpack.c.0.f8e4m3b11 %v447_v55 }
  0xd3   :  { %v452_v57 = vand.u32 2147483647, %v448_v56  ;;  %vm454_vm2 = vcmp.ne.f32.partialorder %v448_v56, %v448_v56  ;;  %v455_v11 = vmul.f32 16.0, %v448_v56 }
  0xd5   :  { %vm904_vm6 = vcmp.gt.f32.partialorder %v452_v57, 29.0  ;;  %v456_v62 = vsel %vm454_vm2, -0.0, %v455_v11 }
  0xd6   :  { %v457_v63 = vsel %vm904_vm6, nan, %v456_v62 }
  0xd7   :  { %476 = vst [vmem:[#allocation22] sm:$0xff] %v791_v12 }
  0xde   :  { %v478_v0 = vld [vmem:[#allocation22 + $0x2] sm:$0x3] }
  0xdf   :  { %v479_v1 = vunpack.c.0.f8e4m3b11 %v478_v0 }
  0xe1   :  { %v483_v5 = vand.u32 2147483647, %v479_v1  ;;  %vm485_vm10 = vcmp.ne.f32.partialorder %v479_v1, %v479_v1  ;;  %v486_v6 = vmul.f32 16.0, %v479_v1 }
  0xe3   :  { %vm911_vm12 = vcmp.gt.f32.partialorder %v483_v5, 29.0  ;;  %v487_v10 = vsel %vm485_vm10, -0.0, %v486_v6 }
  0xe4   :  { %v488_v16 = vsel %vm911_vm12, nan, %v487_v10 }
  0xe5   :  { %507 = vst [vmem:[#allocation23] sm:$0xff] %v791_v12 }
  0xec   :  { %v509_v20 = vld [vmem:[#allocation23 + $0x4] sm:$0x3] }
  0xed   :  { %v510_v21 = vunpack.c.0.f8e4m3b11 %v509_v20 }
  0xef   :  { %v514_v22 = vand.u32 2147483647, %v510_v21  ;;  %vm516_vm14 = vcmp.ne.f32.partialorder %v510_v21, %v510_v21  ;;  %v517_v29 = vmul.f32 16.0, %v510_v21 }
  0xf1   :  { %vm515_vm0 = vcmp.gt.f32.partialorder %v514_v22, 29.0  ;;  %v518_v30 = vsel %vm516_vm14, -0.0, %v517_v29 }
  0xf2   :  { %v519_v34 = vsel %vm515_vm0, nan, %v518_v30 }
  0xf3   :  { %538 = vst [vmem:[#allocation24] sm:$0xff] %v791_v12  ;;  %v745_v49 = vmov 0.0   ;;  %v575_v50 = vpack.c.bf16 %v488_v16, %v457_v63  ;;  %v660_v55 = vld [vmem:[#allocation3] ss:$0 sm:$0xff]  ;;  %vm746_vm10 = vmmov 0   ;;  %v747_v56 = vmov 0  }
  0xf4   :  { %670 = vmatprep.subr.bf16.mxu0 %v745_v49  ;;  %686 = vmatprep.mubr.msk.bf16.mxu0 %vm746_vm10, %v745_v49  ;;  %v574_v12 = vpack.c.bf16 %v427_v51, %v396_v41  ;;  %v573_v57 = vpack.c.bf16 %v365_v28, %v334_v15  ;;  %v572_v41 = vpack.c.bf16 %v304_v4, %v273_v61  ;;  %v639_v31 = vlaneseq  ;;  %s748_s25 = smov [#allocation7]  }
  0xf5   :  { %697 = vset.pattern.permute.xlu0 %v747_v56  ;;  %v571_v13 = vpack.c.bf16 %v242_v54, %v211_v47  ;;  %v570_v59 = vpack.c.bf16 %v181_v40, %v150_v33  ;;  %v569_v45 = vpack.c.bf16 %v119_v26, %v88_v19  ;;  %v635_v33 = vld [vmem:[%s970_s2] sm:$0x1]  ;;  %s651_s26 = sshll.u32 %s748_s25, 4  ;;  %s652_s26 = int_to_ptr.vmem [resolvable:$true] %s651_s26 }
  0xf6   :  { %630 = vperm.xlu0 %697, %v660_v55   ;;  %v640_v32 = vshrl.u32 %v639_v31, 7  ;;  %v637_v17 = vpack.i.b16 %v635_v33, %v635_v33  ;;  %s718_s27 = scalar_lea.vmem %s652_s26, 64  ;;  %p723_p6 = scmp.lt.s32.totalorder %s652_s26, %s652_s26 }
  0xf7   :  { %p719_p5 = scmp.ne.s32.totalorder %s652_s26, %s718_s27  ;;  %p724_p7 = scmp.lt.s32.totalorder %s718_s27, %s718_s27 }
  0xf8   :  { %v641_v38 = vsub.s32 0, %v640_v32 }
  0xf9   :  { %p725_p8 = por %p724_p7, %p723_p6 }
  0xfa   :  { %v540_v35 = vld [vmem:[#allocation24 + $0x6] sm:$0x3]  ;;  %v642_v40 = vrot.slane %v637_v17, %v641_v38 }
  0xfb   :  { %v541_v36 = vunpack.c.0.f8e4m3b11 %v540_v35  ;;  %p726_p9 = pnand %p725_p8, %p719_p5 }
  0xfd   :  { %v545_v37 = vand.u32 2147483647, %v541_v36  ;;  %vm547_vm2 = vcmp.ne.f32.partialorder %v541_v36, %v541_v36  ;;  %v548_v42 = vmul.f32 16.0, %v541_v36 }
  0xff   :  { %vm546_vm6 = vcmp.gt.f32.partialorder %v545_v37, 29.0  ;;  %v549_v43 = vsel %vm547_vm2, -0.0, %v548_v42 }
 0x100   :  { %v550_v44 = vsel %vm546_vm6, nan, %v549_v43 }
 0x101   :  { %v576_v48 = vpack.c.bf16 %v550_v44, %v519_v34 }
 0x103   :  { %671 = vmatpush3.bf16.msra.mxu0 %v576_v48 }
 0x104   :  { %672 = vmatprep.subr.bf16.mxu0 %v745_v49 }
 0x107   :  { %673 = vmatpush3.bf16.msra.mxu0 %v575_v50 }
 0x108   :  { %674 = vmatprep.subr.bf16.mxu0 %v745_v49 }
 0x10b   :  { %675 = vmatpush3.bf16.msra.mxu0 %v574_v12 }
 0x10c   :  { %676 = vmatprep.subr.bf16.mxu0 %v745_v49 }
 0x10f   :  { %677 = vmatpush3.bf16.msra.mxu0 %v573_v57 }
 0x110   :  { %678 = vmatprep.subr.bf16.mxu0 %v745_v49 }
 0x113   :  { %679 = vmatpush3.bf16.msra.mxu0 %v572_v41 }
 0x114   :  { %680 = vmatprep.subr.bf16.mxu0 %v745_v49 }
 0x117   :  { %681 = vmatpush3.bf16.msra.mxu0 %v571_v13 }
 0x118   :  { %682 = vmatprep.subr.bf16.mxu0 %v745_v49 }
 0x11b   :  { %683 = vmatpush3.bf16.msra.mxu0 %v570_v59 }
 0x11c   :  { %684 = vmatprep.subr.bf16.mxu0 %v745_v49 }
 0x11f   :  { %685 = vmatpush3.bf16.msra.mxu0 %v569_v45 }
 0x122   :  { %687 = vmatmul.mubr.bf16.vlgmr.msra.gmra.mxu0 %v72_v8 }
 0x171   :  { %v631_v18 = vpop.permute.xlu0 %630 }
 0x1e2   :  { %v611_v39 = vpop.f32.mrf.mxu0 }
 0x1e3   :  { %v633_v24 = vmul.f32 %v631_v18, %v611_v39 }
 0x1e4   :  { %v688_v25 = vpop.f32.mrf.mxu0 }
 0x1e5   :  { %v634_v19 = vpack.c.bf16 %v633_v24, %v633_v24 }
 0x1e6   :  { %v614_v26 = vpop.f32.mrf.mxu0 }
 0x1e7   :  { %v643_v46 = vadd.bf16 %v642_v40, %v634_v19 }
 0x1e8   :  { %v689_v7 = vpop.f32.mrf.mxu0 }
 0x1e9   :  { %644 = vst [vmem:[#allocation7] sm:$0xf] %v643_v46 }
 0x1ea   :  { %729 = shalt.err (!%p726_p9)
}
 0x1eb   :  { %654 = dma.vmem_to_hbm [thread:$0]  %s652_s26, 64, %s972_s4, [#allocation6]  }
 0x1ec   :  { %740 = dma.done.wait [#allocation6], 64  }
 0x1ed   :  { %741 = vsyncadd [#allocation6], 4294967232 }
 0x1ee   :  { %658 = vsyncpa [#allocation5], 1 }
 0x1ef   :  { %659 = vsyncpa [#allocation6], 1 }

// kernel: tpu_custom_call.1
= control target key start
LH: loop header
LB: loop body
LE: loop exit
PB: predicated region body
PF: predicated region fallthrough
CT: control target
= control target key end

     0   :  { %s1001_s0 = inlined_call_operand.hbm [shape: bf16[16,256], index: 0, kind: input, shape index: {}]   ;;  %s1002_s1 = inlined_call_operand.hbm [shape: bf16[256,512], index: 1, kind: input, shape index: {}]   ;;  %s1003_s2 = inlined_call_operand.vmem [shape: bf16[1,512], index: 2, kind: input, shape index: {}]   ;;  %s1004_s3 = inlined_call_operand.<no memory space> [shape: f32[1,1], index: 3, kind: input, shape index: {}]   ;;  %s1005_s4 = inlined_call_operand.hbm [shape: bf16[16,512], index: 4, kind: output, shape index: {}]  }
   0x1   :  { %v9_v0 = vstv %s1004_s3 }
   0x2   :  { %10 = vst [vmem:[#allocation3] sm:$0x1] %v9_v0 }
   0x3   :  { %11 = vsyncpa [#allocation5], 0 }
   0x4   :  { %12 = vsyncpa [#allocation8], 0 }
   0x5   :  { %13 = vsyncpa [#allocation6], 0  ;;  %s946_s17 = smov [#allocation4]  }
   0x6   :  { %s19_s18 = sshll.u32 %s946_s17, 4  ;;  %s20_s18 = int_to_ptr.vmem [resolvable:$true] %s19_s18 }
   0x7   :  { %s888_s19 = scalar_lea.vmem %s20_s18, 256  ;;  %p893_p1 = scmp.lt.s32.totalorder %s20_s18, %s20_s18 }
   0x8   :  { %p889_p0 = scmp.ne.s32.totalorder %s20_s18, %s888_s19  ;;  %p894_p2 = scmp.lt.s32.totalorder %s888_s19, %s888_s19 }
   0xa   :  { %p895_p3 = por %p894_p2, %p893_p1 }
   0xc   :  { %p896_p4 = pnand %p895_p3, %p889_p0 }
   0xe   :  { %899 = shalt.err (!%p896_p4)
}
   0xf   :  { %s947_s20 = smov 128   ;;  %s948_s21 = smov 8  }
  0x10   :  { %25 = dma.hbm_to_vmem [thread:$0]  %s1001_s0, 256, %s20_s18, [#allocation5], %s947_s20, %s947_s20, %s948_s21  }
  0x11   :  { %s949_s3 = smov [#allocation7]  }
  0x12   :  { %s31_s24 = sshll.u32 %s949_s3, 4  ;;  %s32_s24 = int_to_ptr.vmem [resolvable:$true] %s31_s24 }
  0x13   :  { %s908_s25 = scalar_lea.vmem %s32_s24, 8192  ;;  %p913_p6 = scmp.lt.s32.totalorder %s32_s24, %s32_s24 }
  0x14   :  { %p909_p5 = scmp.ne.s32.totalorder %s32_s24, %s908_s25  ;;  %p914_p7 = scmp.lt.s32.totalorder %s908_s25, %s908_s25 }
  0x16   :  { %p915_p8 = por %p914_p7, %p913_p6 }
  0x18   :  { %p916_p9 = pnand %p915_p8, %p909_p5 }
  0x1a   :  { %919 = shalt.err (!%p916_p9)
}
  0x1b   :  { %s950_s26 = smov 256   ;;  %s951_s27 = smov 16  }
  0x1c   :  { %37 = dma.hbm_to_vmem [thread:$0]  %s1002_s1, 8192, %s32_s24, [#allocation8], %s950_s26, %s950_s26, %s951_s27  }
  0x1d   :  { %940 = dma.done.wait [#allocation5], 256  }
  0x1e   :  { %941 = vsyncadd [#allocation5], 4294967040 }
  0x1f   :  { %942 = dma.done.wait [#allocation8], 8192  }
  0x20   :  { %943 = vsyncadd [#allocation8], 4294959104  ;;  %v952_v1 = vmov 0   ;;  %v781_v2 = vld [vmem:[#allocation7 + $0xe4] ss:$16 sps:$4 sm:$0xff]  }
  0x21   :  { %780 = vset.pattern.permute.xlu0 %v952_v1  ;;  %v783_v3 = vld [vmem:[#allocation7 + $0xec] ss:$16 sps:$4 sm:$0xff]   ;;  %464 = vmatprep.subr.bf16.mxu0 %v781_v2  ;;  %v785_v4 = vld [vmem:[#allocation7 + $0xe0] ss:$16 sps:$4 sm:$0xff]   ;;  %v786_v5 = vld [vmem:[#allocation7 + $0xe8] ss:$16 sps:$4 sm:$0xff]  }
  0x22   :  { %507 = vmatprep.subr.bf16.mxu1 %v783_v3  ;;  %v787_v6 = vld [vmem:[#allocation7 + $0xc4] ss:$16 sps:$4 sm:$0xff]   ;;  %465 = vmatpush1.bf16.msra.mxu0 %v785_v4  ;;  %v789_v7 = vld [vmem:[#allocation7 + $0xcc] ss:$16 sps:$4 sm:$0xff]   ;;  %v791_v8 = vld [vmem:[#allocation7 + $0xc0] ss:$16 sps:$4 sm:$0xff]  }
  0x23   :  { %508 = vmatpush1.bf16.msra.mxu1 %v786_v5  ;;  %466 = vmatprep.subr.bf16.mxu0 %v787_v6  ;;  %v792_v9 = vld [vmem:[#allocation7 + $0xc8] ss:$16 sps:$4 sm:$0xff]   ;;  %v793_v10 = vld [vmem:[#allocation7 + $0xa4] ss:$16 sps:$4 sm:$0xff]   ;;  %v795_v11 = vld [vmem:[#allocation7 + $0xac] ss:$16 sps:$4 sm:$0xff]  }
  0x24   :  { %509 = vmatprep.subr.bf16.mxu1 %v789_v7  ;;  %v797_v12 = vld [vmem:[#allocation7 + $0xa0] ss:$16 sps:$4 sm:$0xff]   ;;  %v798_v13 = vld [vmem:[#allocation7 + $0xa8] ss:$16 sps:$4 sm:$0xff]   ;;  %v799_v14 = vld [vmem:[#allocation7 + $0x84] ss:$16 sps:$4 sm:$0xff]   ;;  %v612_v7 = vlaneseq }
  0x25   :  { %v801_v15 = vld [vmem:[#allocation7 + $0x8c] ss:$16 sps:$4 sm:$0xff]   ;;  %v803_v16 = vld [vmem:[#allocation7 + $0x80] ss:$16 sps:$4 sm:$0xff]   ;;  %v804_v17 = vld [vmem:[#allocation7 + $0x88] ss:$16 sps:$4 sm:$0xff]  }
  0x26   :  { %467 = vmatpush1.bf16.msra.mxu0 %v791_v8  ;;  %v805_v18 = vld [vmem:[#allocation7 + $0x64] ss:$16 sps:$4 sm:$0xff]   ;;  %v807_v19 = vld [vmem:[#allocation7 + $0x6c] ss:$16 sps:$4 sm:$0xff]   ;;  %v809_v20 = vld [vmem:[#allocation7 + $0x60] ss:$16 sps:$4 sm:$0xff]  }
  0x27   :  { %510 = vmatpush1.bf16.msra.mxu1 %v792_v9  ;;  %468 = vmatprep.subr.bf16.mxu0 %v793_v10  ;;  %v810_v21 = vld [vmem:[#allocation7 + $0x68] ss:$16 sps:$4 sm:$0xff]   ;;  %v811_v22 = vld [vmem:[#allocation7 + $0x44] ss:$16 sps:$4 sm:$0xff]   ;;  %v813_v23 = vld [vmem:[#allocation7 + $0x4c] ss:$16 sps:$4 sm:$0xff]  }
  0x28   :  { %511 = vmatprep.subr.bf16.mxu1 %v795_v11  ;;  %v815_v24 = vld [vmem:[#allocation7 + $0x40] ss:$16 sps:$4 sm:$0xff]   ;;  %v816_v25 = vld [vmem:[#allocation7 + $0x48] ss:$16 sps:$4 sm:$0xff]   ;;  %v817_v26 = vld [vmem:[#allocation7 + $0x24] ss:$16 sps:$4 sm:$0xff]  }
  0x29   :  { %v819_v27 = vld [vmem:[#allocation7 + $0x2c] ss:$16 sps:$4 sm:$0xff]   ;;  %v821_v28 = vld [vmem:[#allocation7 + $0x20] ss:$16 sps:$4 sm:$0xff]   ;;  %v822_v29 = vld [vmem:[#allocation7 + $0x28] ss:$16 sps:$4 sm:$0xff]  }
  0x2a   :  { %469 = vmatpush1.bf16.msra.mxu0 %v797_v12  ;;  %v823_v30 = vld [vmem:[#allocation7 + $0x4] ss:$16 sps:$4 sm:$0xff]   ;;  %v825_v31 = vld [vmem:[#allocation7 + $0xc] ss:$16 sps:$4 sm:$0xff]   ;;  %v827_v32 = vld [vmem:[#allocation7] ss:$16 sps:$4 sm:$0xff]  }
  0x2b   :  { %512 = vmatpush1.bf16.msra.mxu1 %v798_v13  ;;  %470 = vmatprep.subr.bf16.mxu0 %v799_v14  ;;  %v828_v33 = vld [vmem:[#allocation7 + $0x8] ss:$16 sps:$4 sm:$0xff]   ;;  %v829_v34 = vld [vmem:[#allocation7 + $0x1e4] ss:$16 sps:$4 sm:$0xff]   ;;  %v831_v35 = vld [vmem:[#allocation7 + $0x1ec] ss:$16 sps:$4 sm:$0xff]  }
  0x2c   :  { %513 = vmatprep.subr.bf16.mxu1 %v801_v15  ;;  %v833_v36 = vld [vmem:[#allocation7 + $0x1e0] ss:$16 sps:$4 sm:$0xff]   ;;  %v834_v37 = vld [vmem:[#allocation7 + $0x1e8] ss:$16 sps:$4 sm:$0xff]   ;;  %v835_v38 = vld [vmem:[#allocation7 + $0x1c4] ss:$16 sps:$4 sm:$0xff]  }
  0x2d   :  { %v837_v39 = vld [vmem:[#allocation7 + $0x1cc] ss:$16 sps:$4 sm:$0xff]   ;;  %v839_v40 = vld [vmem:[#allocation7 + $0x1c0] ss:$16 sps:$4 sm:$0xff]   ;;  %v840_v41 = vld [vmem:[#allocation7 + $0x1c8] ss:$16 sps:$4 sm:$0xff]  }
  0x2e   :  { %471 = vmatpush1.bf16.msra.mxu0 %v803_v16  ;;  %v841_v42 = vld [vmem:[#allocation7 + $0x1a4] ss:$16 sps:$4 sm:$0xff]   ;;  %v843_v43 = vld [vmem:[#allocation7 + $0x1ac] ss:$16 sps:$4 sm:$0xff]   ;;  %v845_v44 = vld [vmem:[#allocation7 + $0x1a0] ss:$16 sps:$4 sm:$0xff]  }
  0x2f   :  { %514 = vmatpush1.bf16.msra.mxu1 %v804_v17  ;;  %472 = vmatprep.subr.bf16.mxu0 %v805_v18  ;;  %v846_v45 = vld [vmem:[#allocation7 + $0x1a8] ss:$16 sps:$4 sm:$0xff]   ;;  %v847_v46 = vld [vmem:[#allocation7 + $0x184] ss:$16 sps:$4 sm:$0xff]   ;;  %v849_v47 = vld [vmem:[#allocation7 + $0x18c] ss:$16 sps:$4 sm:$0xff]  }
  0x30   :  { %515 = vmatprep.subr.bf16.mxu1 %v807_v19  ;;  %v879_v48 = vld [vmem:[#allocation4 + $0x4] ss:$8 sps:$4 sm:$0xff]   ;;  %v851_v49 = vld [vmem:[#allocation7 + $0x180] ss:$16 sps:$4 sm:$0xff]   ;;  %v852_v50 = vld [vmem:[#allocation7 + $0x188] ss:$16 sps:$4 sm:$0xff]  }
  0x31   :  { %v765_v51 = vld [vmem:[#allocation3] ss:$0 sm:$0xff]  ;;  %v853_v52 = vld [vmem:[#allocation7 + $0x164] ss:$16 sps:$4 sm:$0xff]   ;;  %496 = vmatprep.mubr.bf16.mxu0 %v879_v48  ;;  %539 = vmatprep.mubr.bf16.mxu1 %v879_v48  ;;  %v857_v54 = vld [vmem:[#allocation7 + $0x160] ss:$16 sps:$4 sm:$0xff]  }
  0x32   :  { %473 = vmatpush1.bf16.msra.mxu0 %v809_v20  ;;  %v855_v53 = vld [vmem:[#allocation7 + $0x16c] ss:$16 sps:$4 sm:$0xff]   ;;  %584 = vperm.xlu0 %780, %v765_v51   ;;  %v858_v55 = vld [vmem:[#allocation7 + $0x168] ss:$16 sps:$4 sm:$0xff]   ;;  %v859_v56 = vld [vmem:[#allocation7 + $0x144] ss:$16 sps:$4 sm:$0xff]  }
  0x33   :  { %516 = vmatpush1.bf16.msra.mxu1 %v810_v21  ;;  %474 = vmatprep.subr.bf16.mxu0 %v811_v22  ;;  %v861_v57 = vld [vmem:[#allocation7 + $0x14c] ss:$16 sps:$4 sm:$0xff]   ;;  %v863_v58 = vld [vmem:[#allocation7 + $0x140] ss:$16 sps:$4 sm:$0xff]   ;;  %v864_v59 = vld [vmem:[#allocation7 + $0x148] ss:$16 sps:$4 sm:$0xff]  }
  0x34   :  { %517 = vmatprep.subr.bf16.mxu1 %v813_v23  ;;  %v865_v60 = vld [vmem:[#allocation7 + $0x124] ss:$16 sps:$4 sm:$0xff]   ;;  %v867_v61 = vld [vmem:[#allocation7 + $0x12c] ss:$16 sps:$4 sm:$0xff]   ;;  %v869_v62 = vld [vmem:[#allocation7 + $0x120] ss:$16 sps:$4 sm:$0xff]  }
  0x35   :  { %v870_v63 = vld [vmem:[#allocation7 + $0x128] ss:$16 sps:$4 sm:$0xff]   ;;  %v871_v0 = vld [vmem:[#allocation7 + $0x104] ss:$16 sps:$4 sm:$0xff]   ;;  %v873_v1 = vld [vmem:[#allocation7 + $0x10c] ss:$16 sps:$4 sm:$0xff]  }
  0x36   :  { %475 = vmatpush1.bf16.msra.mxu0 %v815_v24  ;;  %v875_v2 = vld [vmem:[#allocation7 + $0x100] ss:$16 sps:$4 sm:$0xff]   ;;  %v876_v3 = vld [vmem:[#allocation7 + $0x108] ss:$16 sps:$4 sm:$0xff]   ;;  %v953_v5 = vmov 1966171168  }
  0x37   :  { %518 = vmatpush1.bf16.msra.mxu1 %v816_v25  ;;  %476 = vmatprep.subr.bf16.mxu0 %v817_v26  ;;  %v877_v4 = vld [vmem:[#allocation4] ss:$8 sps:$4 sm:$0xff]   ;;  %v610_v6 = vunpack.c.l.s4 %v953_v5  ;;  %v613_v9 = vshrl.u32 %v612_v7, 7 }
  0x38   :  { %519 = vmatprep.subr.bf16.mxu1 %v819_v27  ;;  %v766_v10 = vld.sshfl [vmem:[%s1003_s2] sm:$0x33 pattern:$0x75316420]  ;;  %s954_s2 = smov [#allocation9]  }
  0x39   :  { %v611_v8 = vunpack.c.0.s8 %v610_v6  ;;  %v608_v12 = vcombine.high %v766_v10, %v766_v10  ;;  %v630_v20 = vsub.s32 0, %v613_v9  ;;  %s686_s30 = sshll.u32 %s954_s2, 4  ;;  %s687_s30 = int_to_ptr.vmem [resolvable:$true] %s686_s30 }
  0x3a   :  { %477 = vmatpush1.bf16.msra.mxu0 %v821_v28  ;;  %s920_s5 = scalar_lea.vmem %s687_s30, 512  ;;  %p925_p11 = scmp.lt.s32.totalorder %s687_s30, %s687_s30 }
  0x3b   :  { %520 = vmatpush1.bf16.msra.mxu1 %v822_v29  ;;  %478 = vmatprep.subr.bf16.mxu0 %v823_v30  ;;  %v614_v11 = vsub.s32 %v611_v8, %v613_v9  ;;  %p921_p10 = scmp.ne.s32.totalorder %s687_s30, %s920_s5  ;;  %p926_p12 = scmp.lt.s32.totalorder %s920_s5, %s920_s5 }
  0x3c   :  { %521 = vmatprep.subr.bf16.mxu1 %v825_v31 }
  0x3d   :  { %v615_v13 = vrot.slane %v766_v10, %v614_v11  ;;  %v622_v14 = vrot.slane %v608_v12, %v614_v11  ;;  %p927_p13 = por %p926_p12, %p925_p11 }
  0x3e   :  { %479 = vmatpush1.bf16.msra.mxu0 %v827_v32 }
  0x3f   :  { %522 = vmatpush1.bf16.msra.mxu1 %v828_v33  ;;  %480 = vmatprep.subr.bf16.mxu0 %v829_v34  ;;  %v623_v15 = vcombine.high %v615_v13, %v615_v13  ;;  %v624_v16 = vcombine.high %v622_v14, %v622_v14  ;;  %v626_v19 = vpack.i.b16 %v615_v13, %v615_v13  ;;  %p928_p0 = pnand %p927_p13, %p921_p10 }
  0x40   :  { %523 = vmatprep.subr.bf16.mxu1 %v831_v35  ;;  %v633_v25 = vpack.i.b16 %v622_v14, %v622_v14 }
  0x41   :  { %v640_v21 = vpack.i.b16 %v623_v15, %v623_v15  ;;  %v647_v26 = vpack.i.b16 %v624_v16, %v624_v16  ;;  %v631_v28 = vrot.slane %v626_v19, %v630_v20 }
  0x42   :  { %481 = vmatpush2.bf16.msra.mxu0 %v833_v36 }
  0x43   :  { %524 = vmatpush2.bf16.msra.mxu1 %v834_v37  ;;  %482 = vmatprep.subr.bf16.mxu0 %v835_v38  ;;  %v645_v30 = vrot.slane %v640_v21, %v630_v20  ;;  %v638_v38 = vrot.slane %v633_v25, %v630_v20 }
  0x44   :  { %525 = vmatprep.subr.bf16.mxu1 %v837_v39 }
  0x46   :  { %483 = vmatpush2.bf16.msra.mxu0 %v839_v40  ;;  %v652_v40 = vrot.slane %v647_v26, %v630_v20 }
  0x47   :  { %526 = vmatpush2.bf16.msra.mxu1 %v840_v41  ;;  %484 = vmatprep.subr.bf16.mxu0 %v841_v42 }
  0x48   :  { %527 = vmatprep.subr.bf16.mxu1 %v843_v43 }
  0x4a   :  { %485 = vmatpush2.bf16.msra.mxu0 %v845_v44 }
  0x4b   :  { %528 = vmatpush2.bf16.msra.mxu1 %v846_v45  ;;  %486 = vmatprep.subr.bf16.mxu0 %v847_v46 }
  0x4c   :  { %529 = vmatprep.subr.bf16.mxu1 %v849_v47 }
  0x4e   :  { %487 = vmatpush2.bf16.msra.mxu0 %v851_v49 }
  0x4f   :  { %530 = vmatpush2.bf16.msra.mxu1 %v852_v50  ;;  %488 = vmatprep.subr.bf16.mxu0 %v853_v52 }
  0x50   :  { %531 = vmatprep.subr.bf16.mxu1 %v855_v53 }
  0x52   :  { %489 = vmatpush2.bf16.msra.mxu0 %v857_v54 }
  0x53   :  { %532 = vmatpush2.bf16.msra.mxu1 %v858_v55  ;;  %490 = vmatprep.subr.bf16.mxu0 %v859_v56 }
  0x54   :  { %533 = vmatprep.subr.bf16.mxu1 %v861_v57 }
  0x56   :  { %491 = vmatpush2.bf16.msra.mxu0 %v863_v58 }
  0x57   :  { %534 = vmatpush2.bf16.msra.mxu1 %v864_v59  ;;  %492 = vmatprep.subr.bf16.mxu0 %v865_v60 }
  0x58   :  { %535 = vmatprep.subr.bf16.mxu1 %v867_v61 }
  0x5a   :  { %493 = vmatpush2.bf16.msra.mxu0 %v869_v62 }
  0x5b   :  { %536 = vmatpush2.bf16.msra.mxu1 %v870_v63  ;;  %494 = vmatprep.subr.bf16.mxu0 %v871_v0 }
  0x5c   :  { %537 = vmatprep.subr.bf16.mxu1 %v873_v1 }
  0x5e   :  { %495 = vmatpush2.bf16.msra.mxu0 %v875_v2 }
  0x5f   :  { %538 = vmatpush2.bf16.msra.mxu1 %v876_v3 }
  0x61   :  { %497 = vmatmul.mubr.bf16.vlgmr.msra.gmra.mxu0 %v877_v4 }
  0x62   :  { %540 = vmatmul.mubr.bf16.vlgmr.msra.gmra.mxu1 %v877_v4 }
  0xad   :  { %v585_v22 = vpop.permute.xlu0 %584 }
 0x121   :  { %v498_v17 = vpop.f32.mrf.mxu0 }
 0x122   :  { %v541_v18 = vpop.f32.mrf.mxu1  ;;  %v587_v31 = vmul.f32 %v585_v22, %v498_v17 }
 0x123   :  { %v500_v23 = vpop.f32.mrf.mxu0  ;;  %v589_v32 = vmul.f32 %v585_v22, %v541_v18 }
 0x124   :  { %v543_v24 = vpop.f32.mrf.mxu1  ;;  %v588_v35 = vmul.f32 %v585_v22, %v500_v23 }
 0x125   :  { %v502_v27 = vpop.f32.mrf.mxu0  ;;  %v590_v36 = vmul.f32 %v585_v22, %v543_v24 }
 0x126   :  { %v545_v29 = vpop.f32.mrf.mxu1  ;;  %v591_v33 = vmul.f32 %v585_v22, %v502_v27 }
 0x127   :  { %v593_v34 = vmul.f32 %v585_v22, %v545_v29  ;;  %v504_v37 = vpop.f32.mrf.mxu0 }
 0x128   :  { %v547_v39 = vpop.f32.mrf.mxu1  ;;  %v595_v41 = vpack.c.bf16 %v591_v33, %v587_v31  ;;  %v592_v43 = vmul.f32 %v585_v22, %v504_v37 }
 0x129   :  { %v597_v42 = vpack.c.bf16 %v593_v34, %v589_v32  ;;  %v594_v44 = vmul.f32 %v585_v22, %v547_v39 }
 0x12a   :  { %v596_v45 = vpack.c.bf16 %v592_v43, %v588_v35  ;;  %v653_v47 = vadd.bf16 %v631_v28, %v595_v41 }
 0x12b   :  { %v598_v46 = vpack.c.bf16 %v594_v44, %v590_v36  ;;  %v655_v48 = vadd.bf16 %v645_v30, %v597_v42 }
 0x12c   :  { %v654_v49 = vadd.bf16 %v638_v38, %v596_v45 }
 0x12d   :  { %v656_v50 = vadd.bf16 %v652_v40, %v598_v46 }
 0x12e   :  { %v767_v51 = vcombine.low %v653_v47, %v654_v49  ;;  %v769_v52 = vcombine.high %v653_v47, %v654_v49 }
 0x12f   :  { %v768_v53 = vcombine.low %v655_v48, %v656_v50  ;;  %v770_v54 = vcombine.high %v655_v48, %v656_v50 }
 0x130   :  { %677 = vst [vmem:[#allocation9] sm:$0xff] %v767_v51  ;;  %679 = vst [vmem:[#allocation9 + $0x10] sm:$0xff] %v769_v52 }
 0x131   :  { %678 = vst [vmem:[#allocation9 + $0x8] sm:$0xff] %v768_v53  ;;  %680 = vst [vmem:[#allocation9 + $0x18] sm:$0xff] %v770_v54 }
 0x132   :  { %931 = shalt.err (!%p928_p0)
}
 0x133   :  { %692 = dma.vmem_to_hbm [thread:$0]  %s687_s30, 512, %s1005_s4, [#allocation6], %s950_s26, %s950_s26, %s951_s27  }
 0x134   :  { %944 = dma.done.wait [#allocation6], 512  }
 0x135   :  { %945 = vsyncadd [#allocation6], 4294966784 }
 0x136   :  { %696 = vsyncpa [#allocation5], 1 }
 0x137   :  { %697 = vsyncpa [#allocation8], 1 }
 0x138   :  { %698 = vsyncpa [#allocation6], 1 }

</bundles_post_ra>
